<compile_context>
chip_gen: v5e
topology: v5e:2x2
jax: 0.10.0
libtpu: 0.0.40
codegen_flags: <defaults>
</compile_context>

<pallas_src>
import math

import jax
import jax.numpy as jnp
from jax.experimental import pallas as pl
from jax.experimental.pallas import tpu as pltpu


def _round_up(x, m):
    return ((x + m - 1) // m) * m


def _vmem_limit_bytes():
    """~75% of physical VMEM: 48 MiB on v7x (64 MiB), 96 MiB on v5e/v6e (128 MiB)."""
    cap = 64 * 1024 * 1024  # conservative default (v7x per-TC VMEM)
    try:
        info = pltpu.get_tpu_info()
        cap = int(getattr(info, "vmem_capacity_bytes", cap) or cap)
    except Exception:
        pass
    return min((cap * 3) // 4, 100 * 1024 * 1024)


# ---------------------------------------------------------------------------
# Kernels. Grid = (batch_tiles, class_tiles, k_tiles); K is the innermost
# (reduction, "arbitrary") axis; the output block is resident across it.
# ---------------------------------------------------------------------------
def logreg_kernel_f32(x_ref, w_ref, b_ref, o_ref):
    # f32 output: accumulate directly into the resident output block (no scratch).
    k = pl.program_id(2)

    @pl.when(k == 0)
    def _():
        o_ref[...] = jnp.zeros_like(o_ref)

    o_ref[...] += jnp.dot(x_ref[...], w_ref[...],
                          preferred_element_type=jnp.float32)

    @pl.when(k == pl.num_programs(2) - 1)
    def _():
        o_ref[...] += b_ref[...]


def logreg_kernel_acc(x_ref, w_ref, b_ref, o_ref, acc_ref):
    # Non-f32 output: f32 VMEM accumulator, cast once at the last K step.
    k = pl.program_id(2)

    @pl.when(k == 0)
    def _():
        acc_ref[...] = jnp.zeros_like(acc_ref)

    acc_ref[...] += jnp.dot(x_ref[...], w_ref[...],
                            preferred_element_type=jnp.float32)

    @pl.when(k == pl.num_programs(2) - 1)
    def _():
        o_ref[...] = (acc_ref[...] + b_ref[...]).astype(o_ref.dtype)


# ---------------------------------------------------------------------------
# Forward wrapper: x (N, ft_in), w_t (k_pad, c_pad) pre-transposed/padded,
# b_p (1, c_pad) pre-padded. Returns (N, nb_classes).
# ---------------------------------------------------------------------------
def logreg_forward(x, w_t, b_p, nb_classes, *, tile_k, tile_c, tile_m=512):
    N, ft_in = x.shape
    k_pad, c_pad = w_t.shape
    out_dtype = x.dtype

    # Zero-pad the contraction axis of x only when K-tiling forces it (huge ft_in).
    if k_pad != ft_in:
        x = jnp.pad(x, ((0, 0), (0, k_pad - ft_in)))

    # Batch tiling: multiple of the sublane packing (8 for f32, 16 for 16-bit),
    # no batch padding of x; ragged last block is masked by Pallas.
    sub = 16 if jnp.dtype(x.dtype).itemsize < 4 else 8
    tile_m = _round_up(min(tile_m, _round_up(N, sub)), sub)
    grid_m = pl.cdiv(N, tile_m)
    if grid_m == 1 and N > 4 * sub:
        # keep >=2 batch blocks so dual-TC parts (v7x) can shard grid axis 0
        tile_m = _round_up(pl.cdiv(N, 2), sub)
        grid_m = pl.cdiv(N, tile_m)

    grid_c = c_pad // tile_c
    grid_k = k_pad // tile_k
    grid = (grid_m, grid_c, grid_k)

    itemsize = jnp.dtype(x.dtype).itemsize
    weight_passes = grid_m if (grid_k > 1 or grid_c > 1) else 1
    cost = pl.CostEstimate(
        flops=2 * N * ft_in * nb_classes,
        transcendentals=0,
        bytes_accessed=int(N * k_pad * itemsize
                           + k_pad * c_pad * w_t.dtype.itemsize * weight_passes
                           + N * c_pad * jnp.dtype(out_dtype).itemsize
                           + c_pad * b_p.dtype.itemsize),
    )

    if out_dtype == jnp.float32:
        kernel = logreg_kernel_f32
        scratch = []
    else:
        kernel = logreg_kernel_acc
        scratch = [pltpu.VMEM((tile_m, tile_c), jnp.float32)]

    out = pl.pallas_call(
        kernel,
        out_shape=jax.ShapeDtypeStruct((N, c_pad), out_dtype),
        grid_spec=pltpu.PrefetchScalarGridSpec(
            num_scalar_prefetch=0,
            grid=grid,
            in_specs=[
                pl.BlockSpec((tile_m, tile_k), lambda i, c, k: (i, k)),
                pl.BlockSpec((tile_k, tile_c), lambda i, c, k: (k, c)),
                pl.BlockSpec((1, tile_c), lambda i, c, k: (0, c)),
            ],
            out_specs=pl.BlockSpec((tile_m, tile_c), lambda i, c, k: (i, c)),
            scratch_shapes=scratch,
        ),
        compiler_params=pltpu.CompilerParams(
            dimension_semantics=("parallel", "parallel", "arbitrary"),
            vmem_limit_bytes=_vmem_limit_bytes(),
        ),
        cost_estimate=cost,
    )(x, w_t, b_p)

    return out[:, :nb_classes]


def xavier_uniform(key, out_features, in_features, dtype=jnp.float32):
    # Matches torch.nn.init.xavier_uniform_ (gain=1.0) on a (out, in) weight.
    limit = math.sqrt(6.0 / (in_features + out_features))
    return jax.random.uniform(key, (out_features, in_features), dtype,
                              minval=-limit, maxval=limit)


class LogReg:
    """JAX/Pallas port of SEComm.LogReg. forward(seq) = seq @ W^T + b."""

    def __init__(self, ft_in, nb_classes, key, dtype=jnp.float32,
                 tile_k_max=4096, tile_c_max=256):
        self.ft_in = ft_in
        self.nb_classes = nb_classes

        # PyTorch-layout parameters (xavier_uniform weight, zero bias).
        self.weight = xavier_uniform(key, nb_classes, ft_in, dtype)  # (C, K)
        self.bias = jnp.zeros((nb_classes,), dtype)

        # --- one-time padded / transposed kernel operands (hoisted from hot path)
        self.c_pad = _round_up(nb_classes, 128)          # lane-dense class axis
        self.tile_c = min(self.c_pad, tile_c_max)        # multiple of 128
        if ft_in <= tile_k_max:                          # weight stays VMEM-resident
            self.tile_k = ft_in
            self.k_pad = ft_in
        else:                                            # K-tile only for huge ft_in
            self.tile_k = tile_k_max
            self.k_pad = _round_up(ft_in, tile_k_max)

        w_t = self.weight.T                               # (K, C), NN-layout matmul
        self.w_t = jnp.pad(w_t, ((0, self.k_pad - ft_in),
                                 (0, self.c_pad - nb_classes)))
        self.b_p = jnp.pad(self.bias, (0, self.c_pad - nb_classes)).reshape(1, self.c_pad)

        # TODO(synk): optionally stream x/weight as bf16 (f32 accumulate) once
        # gated on an accuracy check; kept f32 here to match PyTorch numerics.

    def __call__(self, seq):
        return logreg_forward(seq, self.w_t, self.b_p, self.nb_classes,
                              tile_k=self.tile_k, tile_c=self.tile_c)


if __name__ == "__main__":
    key = jax.random.PRNGKey(0)
    k_w, k_x = jax.random.split(key)

    batch, ft_in, nb_classes = 8, 32, 16

    model = LogReg(ft_in, nb_classes, k_w)
    x = jax.random.normal(k_x, (batch, ft_in), jnp.float32)

    out = model(x)
    out = jax.block_until_ready(out)

    # sanity check against plain JAX reference
    ref = x @ model.weight.T + model.bias
    assert out.shape == (batch, nb_classes)
    assert jnp.allclose(out, ref, atol=1e-5, rtol=1e-5)

    print("KERNEL_OK")
</pallas_src>

<mosaic_0001>
module attributes {stable_mosaic.version = 11 : i64} {
  func.func @logreg_kernel_f32(%arg0: i32, %arg1: i32, %arg2: i32, %arg3: memref<8x32xf32, #tpu.memory_space<vmem>>, %arg4: memref<32x128xf32, #tpu.memory_space<vmem>>, %arg5: memref<1x128xf32, #tpu.memory_space<vmem>>, %arg6: memref<8x128xf32, #tpu.memory_space<vmem>>) attributes {dimension_semantics = [#tpu.dimension_semantics<parallel>, #tpu.dimension_semantics<parallel>, #tpu.dimension_semantics<arbitrary>], iteration_bounds = array<i64: 1, 1, 1>, scalar_prefetch = 0 : i64, scratch_operands = 0 : i64, tpu.core_type = #tpu.core_type<tc>, window_params = [{transform_indices = @transform_0, window_bounds = array<i64: 8, 32>}, {transform_indices = @transform_1, window_bounds = array<i64: 32, 128>}, {transform_indices = @transform_2, window_bounds = array<i64: 1, 128>}, {transform_indices = @transform_3, window_bounds = array<i64: 8, 128>}]} {
    %c0_i32 = arith.constant 0 : i32
    %0 = arith.cmpi eq, %arg2, %c0_i32 : i32
    %1 = arith.extui %0 : i1 to i32
    %c0_i32_0 = arith.constant 0 : i32
    %2 = arith.cmpi ne, %1, %c0_i32_0 : i32
    scf.if %2 {
      %cst_10 = arith.constant 0.000000e+00 : f32
      %12 = vector.broadcast %cst_10 : f32 to vector<8x128xf32>
      %c0_11 = arith.constant 0 : index
      %c0_12 = arith.constant 0 : index
      %13 = vector.load %arg6[%c0_11, %c0_12] : memref<8x128xf32, #tpu.memory_space<vmem>>, vector<8x128xf32>
      tpu.vector_store %arg6[%c0_11, %c0_12], %12 {strides = array<i32>} : memref<8x128xf32, #tpu.memory_space<vmem>>, vector<8x128xf32>,
    } else {
    }
    %c0 = arith.constant 0 : index
    %c0_1 = arith.constant 0 : index
    %3 = vector.load %arg6[%c0, %c0_1] : memref<8x128xf32, #tpu.memory_space<vmem>>, vector<8x128xf32>
    %c0_2 = arith.constant 0 : index
    %c0_3 = arith.constant 0 : index
    %4 = vector.load %arg3[%c0_2, %c0_3] : memref<8x32xf32, #tpu.memory_space<vmem>>, vector<8x32xf32>
    %c0_4 = arith.constant 0 : index
    %c0_5 = arith.constant 0 : index
    %5 = vector.load %arg4[%c0_4, %c0_5] : memref<32x128xf32, #tpu.memory_space<vmem>>, vector<32x128xf32>
    %cst = arith.constant dense<0.000000e+00> : vector<8x128xf32>
    %6 = tpu.matmul %4, %5, %cst {dimension_numbers = #tpu.dot_dimension_numbers<[1], [0], [0], [1], [0, 0, 1, 1], [], []>} : vector<8x32xf32>, vector<32x128xf32>, vector<8x128xf32> -> vector<8x128xf32>
    %7 = arith.addf %3, %6 : vector<8x128xf32>
    %c0_6 = arith.constant 0 : index
    %c0_7 = arith.constant 0 : index
    %8 = vector.load %arg6[%c0_6, %c0_7] : memref<8x128xf32, #tpu.memory_space<vmem>>, vector<8x128xf32>
    tpu.vector_store %arg6[%c0_6, %c0_7], %7 {strides = array<i32>} : memref<8x128xf32, #tpu.memory_space<vmem>>, vector<8x128xf32>,
    %c0_i32_8 = arith.constant 0 : i32
    %9 = arith.cmpi eq, %arg2, %c0_i32_8 : i32
    %10 = arith.extui %9 : i1 to i32
    %c0_i32_9 = arith.constant 0 : i32
    %11 = arith.cmpi ne, %10, %c0_i32_9 : i32
    scf.if %11 {
      %c0_10 = arith.constant 0 : index
      %c0_11 = arith.constant 0 : index
      %12 = vector.load %arg6[%c0_10, %c0_11] : memref<8x128xf32, #tpu.memory_space<vmem>>, vector<8x128xf32>
      %c0_12 = arith.constant 0 : index
      %c0_13 = arith.constant 0 : index
      %13 = vector.load %arg5[%c0_12, %c0_13] : memref<1x128xf32, #tpu.memory_space<vmem>>, vector<1x128xf32>
      %14 = vector.broadcast %13 : vector<1x128xf32> to vector<8x128xf32>
      %15 = arith.addf %12, %14 : vector<8x128xf32>
      %c0_14 = arith.constant 0 : index
      %c0_15 = arith.constant 0 : index
      %16 = vector.load %arg6[%c0_14, %c0_15] : memref<8x128xf32, #tpu.memory_space<vmem>>, vector<8x128xf32>
      tpu.vector_store %arg6[%c0_14, %c0_15], %15 {strides = array<i32>} : memref<8x128xf32, #tpu.memory_space<vmem>>, vector<8x128xf32>,
    } else {
    }
    return
  }
  func.func @transform_0(%arg0: i32, %arg1: i32, %arg2: i32) -> (i32, i32) {
    %c0_i32 = arith.constant 0 : i32
    return %arg0, %arg2 : i32, i32
  }
  func.func @transform_1(%arg0: i32, %arg1: i32, %arg2: i32) -> (i32, i32) {
    %c0_i32 = arith.constant 0 : i32
    return %arg2, %arg1 : i32, i32
  }
  func.func @transform_2(%arg0: i32, %arg1: i32, %arg2: i32) -> (i32, i32) {
    %c0_i32 = arith.constant 0 : i32
    %c0_i32_0 = arith.constant 0 : i32
    return %c0_i32, %arg1 : i32, i32
  }
  func.func @transform_3(%arg0: i32, %arg1: i32, %arg2: i32) -> (i32, i32) {
    %c0_i32 = arith.constant 0 : i32
    return %arg0, %arg1 : i32, i32
  }
}

</mosaic_0001>

<bundles_post_ra>
// kernel: tpu_custom_call.1
= control target key start
LH: loop header
LB: loop body
LE: loop exit
PB: predicated region body
PF: predicated region fallthrough
CT: control target
= control target key end

     0   :  { %8 = vsyncpa [#allocation3], 0  ;;  %s233_s0 = inlined_call_operand.hbm [shape: f32[8,32], index: 0, kind: input, shape index: {}]   ;;  %s234_s1 = inlined_call_operand.hbm [shape: f32[32,128], index: 1, kind: input, shape index: {}]   ;;  %s235_s2 = inlined_call_operand.vmem [shape: f32[1,128], index: 2, kind: input, shape index: {}]   ;;  %s236_s3 = inlined_call_operand.hbm [shape: f32[8,128], index: 3, kind: output, shape index: {}]  }
   0x1   :  { %9 = vsyncpa [#allocation6], 0 }
   0x2   :  { %10 = vsyncpa [#allocation4], 0  ;;  %s16_s14 = sshll.u32 %s233_s0, 4  ;;  %s196_s15 = smov [#allocation2]   ;;  %s17_s14 = int_to_ptr.hbm [resolvable:$true] %s16_s14 }
   0x3   :  { %s18_s16 = sshll.u32 %s196_s15, 4  ;;  %s26_s19 = sshll.u32 %s234_s1, 4  ;;  %s19_s16 = int_to_ptr.vmem [resolvable:$true] %s18_s16  ;;  %s27_s19 = int_to_ptr.hbm [resolvable:$true] %s26_s19 }
   0x4   :  { %21 = dma.hbm_to_vmem [thread:$0]  %s17_s14, 128, %s19_s16, [#allocation3]  }
   0x5   :  { %s197_s20 = smov [#allocation5]   ;;  %s198_s22 = smov 128  }
   0x6   :  { %s28_s21 = sshll.u32 %s197_s20, 4  ;;  %s199_s23 = smov 8   ;;  %s29_s21 = int_to_ptr.vmem [resolvable:$true] %s28_s21 }
   0x7   :  { %34 = dma.hbm_to_vmem [thread:$0]  %s27_s19, 512, %s29_s21, [#allocation6], %s198_s22, %s198_s22, %s199_s23  }
   0x8   :  { %190 = dma.done.wait [#allocation3], 128  }
   0x9   :  { %191 = vsyncadd [#allocation3], 4294967168 }
   0xa   :  { %192 = dma.done.wait [#allocation6], 512  }
   0xb   :  { %193 = vsyncadd [#allocation6], 4294966784  ;;  %v55_v0 = vld [vmem:[#allocation5 + $0x18] sm:$0xff]  ;;  %v54_v1 = vld [vmem:[#allocation5 + $0x10] sm:$0xff]  ;;  %vm56_vm0 = vcmask 261120   ;;  %s200_s24 = smov [#allocation7]  }
   0xc   :  { %72 = vmatpush.msra.mxu0 %v55_v0  ;;  %v53_v2 = vld [vmem:[#allocation5 + $0x8] sm:$0xff]  ;;  %v52_v3 = vld [vmem:[#allocation5] sm:$0xff]  ;;  %v51_v4 = vld [vmem:[#allocation2] sm:$0xff]  ;;  %s97_s25 = sshll.u32 %s200_s24, 4  ;;  %s99_s28 = sshll.u32 %s236_s3, 4  ;;  %s98_s25 = int_to_ptr.vmem [resolvable:$true] %s97_s25  ;;  %s100_s28 = int_to_ptr.hbm [resolvable:$true] %s99_s28 }
   0xd   :  { %v117_v5 = vld [vmem:[%s235_s2] ss:$0 sm:$0xff] }
   0xe   :  { %73 = vmatpush.msra.mxu0 %v54_v1 }
  0x10   :  { %74 = vmatpush.msra.mxu0 %v53_v2 }
  0x12   :  { %75 = vmatpush.msra.mxu0 %v52_v3 }
  0x13   :  { %110 = vmatmul.msk.f32.vlgmr.msra.gmra.mxu0 %vm56_vm0, %v51_v4 }
  0x90   :  { %v77_v6 = vpop.f32.mrf.mxu0 }
  0x91   :  { %v90_v7 = vadd.f32 %v117_v5, %v77_v6 }
  0x93   :  { %91 = vst [vmem:[#allocation7] sm:$0xff] %v90_v7 }
  0x94   :  { %102 = dma.vmem_to_hbm [thread:$0]  %s98_s25, 128, %s100_s28, [#allocation4]  }
  0x95   :  { %194 = dma.done.wait [#allocation4], 128  }
  0x96   :  { %195 = vsyncadd [#allocation4], 4294967168 }
  0x97   :  { %107 = vsyncpa [#allocation3], 1 }
  0x98   :  { %108 = vsyncpa [#allocation6], 1 }
  0x99   :  { %109 = vsyncpa [#allocation4], 1 }

</bundles_post_ra>
